<compile_context>
chip_gen: v6e
topology: v6e:2x2x1
jax: 0.10.0
libtpu: 0.0.40
codegen_flags: <defaults>
</compile_context>

<pallas_src>
import functools

import jax
import jax.numpy as jnp
from jax.experimental import pallas as pl
from jax.experimental.pallas import tpu as pltpu


LANE = 128                 # lane width -> padded N for lane-dense stores
SUBLANE = 8
DEFAULT_TILE_M = 1024      # rows per grid step
VMEM_LIMIT_BYTES = 32 * 1024 * 1024


# ----------------------------- Pallas kernels ------------------------------ #

def _mm_bias_act_kernel(a_ref, w_ref, b_ref, o_ref, *, act: str):
    """One M-tile of act(A @ W + b).  A:[TM,K] bf16, W:[K,Np] bf16, b:[1,Np] f32."""
    acc = jnp.dot(a_ref[...], w_ref[...], preferred_element_type=jnp.float32)
    acc = acc + b_ref[...]
    if act == "leaky_relu":
        acc = jnp.where(acc > 0, acc, 0.2 * acc)
    elif act == "sigmoid":
        # reciprocal goes to the EUP slot (free next to the VPU epilogue)
        acc = pl.reciprocal(1.0 + jnp.exp(-acc), approx=True)
    o_ref[...] = acc.astype(o_ref.dtype)


def _mm_stats_kernel(a_ref, w_ref, y_ref, s_ref, q_ref):
    """One M-tile of A @ W (no bias) plus per-tile channel sum / sum-of-squares.

    Stats are taken on the f32 accumulator; y is written back in bf16 to halve
    intermediate HBM traffic.
    """
    acc = jnp.dot(a_ref[...], w_ref[...], preferred_element_type=jnp.float32)
    y_ref[...] = acc.astype(y_ref.dtype)
    s_ref[0, :, :] = jnp.sum(acc, axis=0, keepdims=True)
    q_ref[0, :, :] = jnp.sum(acc * acc, axis=0, keepdims=True)


def _scale_shift_leaky_kernel(y_ref, sc_ref, sh_ref, o_ref, *, slope: float):
    """Folded BatchNorm affine + LeakyReLU:  o = leaky(y * scale + shift)."""
    y = y_ref[...].astype(jnp.float32) * sc_ref[...] + sh_ref[...]
    o_ref[...] = jnp.where(y > 0, y, slope * y).astype(o_ref.dtype)


# ----------------------------- kernel wrappers ------------------------------ #

def _round_up(x, m):
    return ((x + m - 1) // m) * m


def _n_pad(oc):
    return max(LANE, _round_up(oc, LANE))


def _tile_rows(a, tile_m=DEFAULT_TILE_M):
    """Pick an M tile (multiple of 8) and zero-pad rows to a tile multiple."""
    m = a.shape[0]
    tile = tile_m if m >= tile_m else _round_up(m, SUBLANE)
    mp = _round_up(m, tile)
    if mp != m:
        a = jnp.pad(a, ((0, mp - m), (0, 0)))
    return a, tile, mp // tile


def _compiler_params():
    return pltpu.CompilerParams(
        dimension_semantics=("parallel",),
        vmem_limit_bytes=VMEM_LIMIT_BYTES,
    )


def matmul_bias_act(a, w, b, act, out_dtype):
    """act(A @ W + b) tiled over M.  Returns padded [Mp, Np] slab."""
    a, tile, nt = _tile_rows(a)
    mp, k = a.shape
    npad = w.shape[1]
    return pl.pallas_call(
        functools.partial(_mm_bias_act_kernel, act=act),
        out_shape=jax.ShapeDtypeStruct((mp, npad), out_dtype),
        grid_spec=pltpu.PrefetchScalarGridSpec(
            num_scalar_prefetch=0,
            grid=(nt,),
            in_specs=[
                pl.BlockSpec((tile, k), lambda i: (i, 0)),
                pl.BlockSpec((k, npad), lambda i: (0, 0)),
                pl.BlockSpec((1, npad), lambda i: (0, 0)),
            ],
            out_specs=pl.BlockSpec((tile, npad), lambda i: (i, 0)),
        ),
        compiler_params=_compiler_params(),
    )(a, w, b)


def conv_bn_leaky(a, w, gamma_pad, beta_pad, m_real, *, eps=1e-5, slope=0.2):
    """Hidden layer: conv matmul (+ fused channel stats) -> BN affine + LeakyReLU."""
    a, tile, nt = _tile_rows(a)
    mp, k = a.shape
    npad = w.shape[1]

    y, s, q = pl.pallas_call(
        _mm_stats_kernel,
        out_shape=(
            jax.ShapeDtypeStruct((mp, npad), jnp.bfloat16),
            jax.ShapeDtypeStruct((nt, 1, npad), jnp.float32),
            jax.ShapeDtypeStruct((nt, 1, npad), jnp.float32),
        ),
        grid_spec=pltpu.PrefetchScalarGridSpec(
            num_scalar_prefetch=0,
            grid=(nt,),
            in_specs=[
                pl.BlockSpec((tile, k), lambda i: (i, 0)),
                pl.BlockSpec((k, npad), lambda i: (0, 0)),
            ],
            out_specs=[
                pl.BlockSpec((tile, npad), lambda i: (i, 0)),
                pl.BlockSpec((1, 1, npad), lambda i: (i, 0, 0)),
                pl.BlockSpec((1, 1, npad), lambda i: (i, 0, 0)),
            ],
        ),
        compiler_params=_compiler_params(),
    )(a, w)

    # Tiny per-channel ([Np]) reductions + affine folding -- negligible, kept in XLA.
    ssum = jnp.sum(s, axis=(0, 1))
    sqsum = jnp.sum(q, axis=(0, 1))
    mean = ssum / m_real
    var = sqsum / m_real - mean * mean          # biased variance (train-mode BN)
    scale = gamma_pad * jax.lax.rsqrt(var + eps)
    shift = beta_pad - mean * scale

    z = pl.pallas_call(
        functools.partial(_scale_shift_leaky_kernel, slope=slope),
        out_shape=jax.ShapeDtypeStruct((mp, npad), jnp.bfloat16),
        grid_spec=pltpu.PrefetchScalarGridSpec(
            num_scalar_prefetch=0,
            grid=(nt,),
            in_specs=[
                pl.BlockSpec((tile, npad), lambda i: (i, 0)),
                pl.BlockSpec((1, npad), lambda i: (0, 0)),
                pl.BlockSpec((1, npad), lambda i: (0, 0)),
            ],
            out_specs=pl.BlockSpec((tile, npad), lambda i: (i, 0)),
        ),
        compiler_params=_compiler_params(),
    )(y, scale.reshape(1, npad).astype(jnp.float32),
      shift.reshape(1, npad).astype(jnp.float32))
    return z


# ------------------------------- glue (JAX) -------------------------------- #

def _im2col_nhwc(x, kh, kw, sh, sw, ph, pw):
    """NHWC -> [B*OH*OW, KH*KW*C] patch matrix (K ordered (kh, kw, c))."""
    B, H, W, C = x.shape
    xp = jnp.pad(x, ((0, 0), (ph, ph), (pw, pw), (0, 0)))
    OH = (H + 2 * ph - kh) // sh + 1
    OW = (W + 2 * pw - kw) // sw + 1
    cols = []
    for i in range(kh):
        for j in range(kw):
            cols.append(
                xp[:, i:i + sh * (OH - 1) + 1:sh, j:j + sw * (OW - 1) + 1:sw, :]
            )  # [B, OH, OW, C]
    patches = jnp.stack(cols, axis=3)            # [B, OH, OW, KH*KW, C]
    return patches.reshape(B * OH * OW, kh * kw * C), OH, OW


def _oihw_to_kmajor_bf16(w_oihw, n_pad):
    """PyTorch [OC, IC, KH, KW] -> [KH*KW*IC, OC] (NHWC-im2col K order), N-padded bf16."""
    OC, IC, KH, KW = w_oihw.shape
    w = jnp.transpose(w_oihw, (2, 3, 1, 0)).reshape(KH * KW * IC, OC)
    if n_pad > OC:
        w = jnp.pad(w, ((0, 0), (0, n_pad - OC)))
    return w.astype(jnp.bfloat16)


def _pad_vec(v, n):
    return jnp.pad(v, (0, n - v.shape[0])).astype(jnp.float32)


# -------------------- parameters (PyTorch-equivalent init) ------------------ #

def init_discriminator_params(key, input_dim, label_dim, filter_sizes, output_dim):
    keys = jax.random.split(key, 2 + len(filter_sizes))
    ki = iter(keys)
    half = filter_sizes[0] // 2
    params = {
        "image_conv_w": 0.02 * jax.random.normal(next(ki), (half, input_dim, 4, 4), jnp.float32),
        "image_conv_b": jnp.zeros((half,), jnp.float32),
        "label_conv_w": 0.02 * jax.random.normal(next(ki), (half, label_dim, 4, 4), jnp.float32),
        "label_conv_b": jnp.zeros((half,), jnp.float32),
        "hidden": [],
    }
    for i in range(1, len(filter_sizes)):
        w = 0.02 * jax.random.normal(next(ki), (filter_sizes[i], filter_sizes[i - 1], 4, 4), jnp.float32)
        b = jnp.zeros((filter_sizes[i],), jnp.float32)
        gamma = jnp.ones((filter_sizes[i],), jnp.float32)    # BatchNorm2d defaults
        beta = jnp.zeros((filter_sizes[i],), jnp.float32)
        params["hidden"].append((w, b, gamma, beta))
    params["out_w"] = 0.02 * jax.random.normal(next(ki), (output_dim, filter_sizes[-1], 4, 4), jnp.float32)
    params["out_b"] = jnp.zeros((output_dim,), jnp.float32)
    return params


def prepare_kernel_params(params, input_dim, label_dim, filter_sizes):
    """Convert PyTorch-layout params to kernel-ready (K-major, bf16, N-padded) form."""
    half = filter_sizes[0] // 2
    c0 = filter_sizes[0]
    np0 = _n_pad(c0)
    # Fuse image_conv + label_conv into one block-diagonal conv (one launch, N=c0).
    w0 = jnp.zeros((c0, input_dim + label_dim, 4, 4), jnp.float32)
    w0 = w0.at[:half, :input_dim].set(params["image_conv_w"])
    w0 = w0.at[half:, input_dim:].set(params["label_conv_w"])
    b0 = jnp.concatenate([params["image_conv_b"], params["label_conv_b"]])

    out_dim = params["out_w"].shape[0]
    np_out = _n_pad(out_dim)
    kp = {
        "w0": _oihw_to_kmajor_bf16(w0, np0),
        "b0": _pad_vec(b0, np0).reshape(1, np0),
        "c0": c0,
        "hidden": [],
        "w_out": _oihw_to_kmajor_bf16(params["out_w"], np_out),
        "b_out": _pad_vec(params["out_b"], np_out).reshape(1, np_out),
        "out_dim": out_dim,
    }
    for (w, _b, gamma, beta) in params["hidden"]:
        oc = w.shape[0]
        npd = _n_pad(oc)
        # conv bias dropped: exactly cancelled by train-mode BatchNorm mean subtraction
        kp["hidden"].append({
            "w": _oihw_to_kmajor_bf16(w, npd),
            "oc": oc,
            "gamma": _pad_vec(gamma, npd),
            "beta": _pad_vec(beta, npd),
        })
    return kp


# ------------------------- Discriminator (forward) ------------------------- #

def discriminator_forward(kparams, images_nchw, labels, label_dim, image_size):
    B = images_nchw.shape[0]
    x = jnp.transpose(images_nchw, (0, 2, 3, 1))                 # NHWC once, at entry
    fill = jax.nn.one_hot(labels, label_dim, dtype=x.dtype)[:, None, None, :]
    fill = jnp.broadcast_to(fill, (B, image_size, image_size, label_dim))
    x = jnp.concatenate([x, fill], axis=-1).astype(jnp.bfloat16)  # [B,H,W,Cin+Ld]

    # fused image/label layer: conv(k4,s2,p1) + LeakyReLU(0.2)
    a, OH, OW = _im2col_nhwc(x, 4, 4, 2, 2, 1, 1)
    m = B * OH * OW
    y = matmul_bias_act(a, kparams["w0"], kparams["b0"], act="leaky_relu",
                        out_dtype=jnp.bfloat16)
    h = y[:m, :kparams["c0"]].reshape(B, OH, OW, kparams["c0"])

    # hidden layers: conv(k4,s2,p1, no bias) + BatchNorm2d(train) + LeakyReLU(0.2)
    for layer in kparams["hidden"]:
        a, OH, OW = _im2col_nhwc(h, 4, 4, 2, 2, 1, 1)
        m = B * OH * OW
        z = conv_bn_leaky(a, layer["w"], layer["gamma"], layer["beta"], m)
        h = z[:m, :layer["oc"]].reshape(B, OH, OW, layer["oc"])

    # output layer: conv(k4,s1,p0) + Sigmoid
    a, OH, OW = _im2col_nhwc(h, 4, 4, 1, 1, 0, 0)
    m = B * OH * OW
    y = matmul_bias_act(a, kparams["w_out"], kparams["b_out"], act="sigmoid",
                        out_dtype=jnp.float32)
    out = y[:m, :kparams["out_dim"]].reshape(B, OH, OW, kparams["out_dim"])
    return jnp.transpose(out, (0, 3, 1, 2))                       # back to NCHW


# ---------------------- pure-JAX (f32) reference check ---------------------- #

def _reference_forward(params, images, labels, label_dim, image_size):
    B = images.shape[0]
    fill = jax.nn.one_hot(labels, label_dim, dtype=jnp.float32)[:, :, None, None]
    fill = jnp.broadcast_to(fill, (B, label_dim, image_size, image_size))

    def conv(x, w, b, stride, padding):
        y = jax.lax.conv_general_dilated(
            x, w, window_strides=stride,
            padding=[(padding[0], padding[0]), (padding[1], padding[1])],
            dimension_numbers=("NCHW", "OIHW", "NCHW"))
        return y + b.reshape(1, -1, 1, 1)

    def leaky(v):
        return jnp.where(v > 0, v, 0.2 * v)

    h1 = leaky(conv(images, params["image_conv_w"], params["image_conv_b"], (2, 2), (1, 1)))
    h2 = leaky(conv(fill, params["label_conv_w"], params["label_conv_b"], (2, 2), (1, 1)))
    h = jnp.concatenate([h1, h2], axis=1)
    for (w, b, gamma, beta) in params["hidden"]:
        y = conv(h, w, b, (2, 2), (1, 1))
        mean = jnp.mean(y, axis=(0, 2, 3), keepdims=True)
        var = jnp.mean((y - mean) ** 2, axis=(0, 2, 3), keepdims=True)
        y = (y - mean) * jax.lax.rsqrt(var + 1e-5)
        y = y * gamma.reshape(1, -1, 1, 1) + beta.reshape(1, -1, 1, 1)
        h = leaky(y)
    out = conv(h, params["out_w"], params["out_b"], (1, 1), (0, 0))
    return jax.nn.sigmoid(out)


# ---------------------------------- main ----------------------------------- #

if __name__ == "__main__":
    key = jax.random.PRNGKey(0)
    B, input_dim, label_dim, image_size = 2, 1, 4, 16
    filter_sizes = [8, 16]
    output_dim = 1

    k_img, k_lab, k_par = jax.random.split(key, 3)
    images = jax.random.normal(k_img, (B, input_dim, image_size, image_size), jnp.float32)
    labels = jax.random.randint(k_lab, (B,), 0, label_dim)

    params = init_discriminator_params(k_par, input_dim, label_dim, filter_sizes, output_dim)
    kparams = prepare_kernel_params(params, input_dim, label_dim, filter_sizes)

    fwd = jax.jit(lambda im, lb: discriminator_forward(kparams, im, lb, label_dim, image_size))
    out = jax.block_until_ready(fwd(images, labels))

    assert out.shape == (B, output_dim, 1, 1), out.shape
    assert bool(jnp.all(jnp.isfinite(out)))
    assert bool(jnp.all((out >= -1e-3) & (out <= 1.0 + 1e-3)))

    ref = _reference_forward(params, images, labels, label_dim, image_size)
    assert bool(jnp.allclose(out, ref, atol=3e-2, rtol=3e-2)), (out, ref)

    print("KERNEL_OK")
</pallas_src>

<mosaic_0001>
module attributes {stable_mosaic.version = 11 : i64} {
  func.func @_mm_bias_act_kernel(%arg0: i32, %arg1: memref<128x80xbf16, #tpu.memory_space<vmem>>, %arg2: memref<80x128xbf16, #tpu.memory_space<vmem>>, %arg3: memref<1x128xf32, #tpu.memory_space<vmem>>, %arg4: memref<128x128xbf16, #tpu.memory_space<vmem>>) attributes {dimension_semantics = [#tpu.dimension_semantics<parallel>], iteration_bounds = array<i64: 1>, scalar_prefetch = 0 : i64, scratch_operands = 0 : i64, tpu.core_type = #tpu.core_type<tc>, window_params = [{transform_indices = @transform_0, window_bounds = array<i64: 128, 80>}, {pipeline_mode = #tpu.pipeline_mode<synchronous>, transform_indices = @transform_1, window_bounds = array<i64: 80, 128>}, {pipeline_mode = #tpu.pipeline_mode<synchronous>, transform_indices = @transform_2, window_bounds = array<i64: 1, 128>}, {transform_indices = @transform_3, window_bounds = array<i64: 128, 128>}]} {
    %c0 = arith.constant 0 : index
    %c0_0 = arith.constant 0 : index
    %0 = vector.load %arg1[%c0, %c0_0] : memref<128x80xbf16, #tpu.memory_space<vmem>>, vector<128x80xbf16>
    %c0_1 = arith.constant 0 : index
    %c0_2 = arith.constant 0 : index
    %1 = vector.load %arg2[%c0_1, %c0_2] : memref<80x128xbf16, #tpu.memory_space<vmem>>, vector<80x128xbf16>
    %cst = arith.constant dense<0.000000e+00> : vector<128x128xf32>
    %2 = tpu.matmul %0, %1, %cst {dimension_numbers = #tpu.dot_dimension_numbers<[1], [0], [0], [1], [0, 0, 1, 1], [], []>} : vector<128x80xbf16>, vector<80x128xbf16>, vector<128x128xf32> -> vector<128x128xf32>
    %c0_3 = arith.constant 0 : index
    %c0_4 = arith.constant 0 : index
    %3 = vector.load %arg3[%c0_3, %c0_4] : memref<1x128xf32, #tpu.memory_space<vmem>>, vector<1x128xf32>
    %4 = vector.broadcast %3 : vector<1x128xf32> to vector<128x128xf32>
    %5 = arith.addf %2, %4 : vector<128x128xf32>
    %cst_5 = arith.constant 0.000000e+00 : f32
    %6 = vector.broadcast %cst_5 : f32 to vector<128x128xf32>
    %7 = arith.cmpf ogt, %5, %6 : vector<128x128xf32>
    %cst_6 = arith.constant 2.000000e-01 : f32
    %8 = vector.broadcast %cst_6 : f32 to vector<128x128xf32>
    %9 = arith.mulf %8, %5 : vector<128x128xf32>
    %10 = arith.select %7, %5, %9 : vector<128x128xi1>, vector<128x128xf32>
    %11 = arith.truncf %10 : vector<128x128xf32> to vector<128x128xbf16>
    %c0_7 = arith.constant 0 : index
    %c0_8 = arith.constant 0 : index
    %12 = vector.load %arg4[%c0_7, %c0_8] : memref<128x128xbf16, #tpu.memory_space<vmem>>, vector<128x128xbf16>
    tpu.vector_store %arg4[%c0_7, %c0_8], %11 {strides = array<i32>} : memref<128x128xbf16, #tpu.memory_space<vmem>>, vector<128x128xbf16>,
    return
  }
  func.func @transform_0(%arg0: i32) -> (i32, i32) {
    %c0_i32 = arith.constant 0 : i32
    %c0_i32_0 = arith.constant 0 : i32
    return %arg0, %c0_i32 : i32, i32
  }
  func.func @transform_1(%arg0: i32) -> (i32, i32) {
    %c0_i32 = arith.constant 0 : i32
    %c0_i32_0 = arith.constant 0 : i32
    %c0_i32_1 = arith.constant 0 : i32
    return %c0_i32, %c0_i32_0 : i32, i32
  }
  func.func @transform_2(%arg0: i32) -> (i32, i32) {
    %c0_i32 = arith.constant 0 : i32
    %c0_i32_0 = arith.constant 0 : i32
    %c0_i32_1 = arith.constant 0 : i32
    return %c0_i32, %c0_i32_0 : i32, i32
  }
  func.func @transform_3(%arg0: i32) -> (i32, i32) {
    %c0_i32 = arith.constant 0 : i32
    %c0_i32_0 = arith.constant 0 : i32
    return %arg0, %c0_i32 : i32, i32
  }
}

module attributes {stable_mosaic.version = 11 : i64} {
  func.func @_mm_stats_kernel(%arg0: i32, %arg1: memref<32x128xbf16, #tpu.memory_space<vmem>>, %arg2: memref<128x128xbf16, #tpu.memory_space<vmem>>, %arg3: memref<32x128xbf16, #tpu.memory_space<vmem>>, %arg4: memref<1x1x128xf32, #tpu.memory_space<vmem>>, %arg5: memref<1x1x128xf32, #tpu.memory_space<vmem>>) attributes {dimension_semantics = [#tpu.dimension_semantics<parallel>], iteration_bounds = array<i64: 1>, scalar_prefetch = 0 : i64, scratch_operands = 0 : i64, tpu.core_type = #tpu.core_type<tc>, window_params = [{transform_indices = @transform_0, window_bounds = array<i64: 32, 128>}, {pipeline_mode = #tpu.pipeline_mode<synchronous>, transform_indices = @transform_1, window_bounds = array<i64: 128, 128>}, {transform_indices = @transform_2, window_bounds = array<i64: 32, 128>}, {transform_indices = @transform_3, window_bounds = array<i64: 1, 1, 128>}, {transform_indices = @transform_4, window_bounds = array<i64: 1, 1, 128>}]} {
    %c0 = arith.constant 0 : index
    %c0_0 = arith.constant 0 : index
    %0 = vector.load %arg1[%c0, %c0_0] : memref<32x128xbf16, #tpu.memory_space<vmem>>, vector<32x128xbf16>
    %c0_1 = arith.constant 0 : index
    %c0_2 = arith.constant 0 : index
    %1 = vector.load %arg2[%c0_1, %c0_2] : memref<128x128xbf16, #tpu.memory_space<vmem>>, vector<128x128xbf16>
    %cst = arith.constant dense<0.000000e+00> : vector<32x128xf32>
    %2 = tpu.matmul %0, %1, %cst {dimension_numbers = #tpu.dot_dimension_numbers<[1], [0], [0], [1], [0, 0, 1, 1], [], []>} : vector<32x128xbf16>, vector<128x128xbf16>, vector<32x128xf32> -> vector<32x128xf32>
    %3 = arith.truncf %2 : vector<32x128xf32> to vector<32x128xbf16>
    %c0_3 = arith.constant 0 : index
    %c0_4 = arith.constant 0 : index
    %4 = vector.load %arg3[%c0_3, %c0_4] : memref<32x128xbf16, #tpu.memory_space<vmem>>, vector<32x128xbf16>
    tpu.vector_store %arg3[%c0_3, %c0_4], %3 {strides = array<i32>} : memref<32x128xbf16, #tpu.memory_space<vmem>>, vector<32x128xbf16>,
    %cst_5 = arith.constant dense<0.000000e+00> : vector<128xf32>
    %5 = vector.multi_reduction <add>, %2, %cst_5 [0] : vector<32x128xf32> to vector<128xf32>
    %6 = vector.shape_cast %5 : vector<128xf32> to vector<1x128xf32>
    %c0_6 = arith.constant 0 : index
    %c0_7 = arith.constant 0 : index
    %c0_8 = arith.constant 0 : index
    %7 = vector.load %arg4[%c0_6, %c0_7, %c0_8] : memref<1x1x128xf32, #tpu.memory_space<vmem>>, vector<1x1x128xf32>
    %8 = vector.shape_cast %7 : vector<1x1x128xf32> to vector<1x128xf32>
    %9 = vector.shape_cast %6 : vector<1x128xf32> to vector<1x1x128xf32>
    tpu.vector_store %arg4[%c0_6, %c0_7, %c0_8], %9 {strides = array<i32>} : memref<1x1x128xf32, #tpu.memory_space<vmem>>, vector<1x1x128xf32>,
    %10 = arith.mulf %2, %2 : vector<32x128xf32>
    %cst_9 = arith.constant dense<0.000000e+00> : vector<128xf32>
    %11 = vector.multi_reduction <add>, %10, %cst_9 [0] : vector<32x128xf32> to vector<128xf32>
    %12 = vector.shape_cast %11 : vector<128xf32> to vector<1x128xf32>
    %c0_10 = arith.constant 0 : index
    %c0_11 = arith.constant 0 : index
    %c0_12 = arith.constant 0 : index
    %13 = vector.load %arg5[%c0_10, %c0_11, %c0_12] : memref<1x1x128xf32, #tpu.memory_space<vmem>>, vector<1x1x128xf32>
    %14 = vector.shape_cast %13 : vector<1x1x128xf32> to vector<1x128xf32>
    %15 = vector.shape_cast %12 : vector<1x128xf32> to vector<1x1x128xf32>
    tpu.vector_store %arg5[%c0_10, %c0_11, %c0_12], %15 {strides = array<i32>} : memref<1x1x128xf32, #tpu.memory_space<vmem>>, vector<1x1x128xf32>,
    return
  }
  func.func @transform_0(%arg0: i32) -> (i32, i32) {
    %c0_i32 = arith.constant 0 : i32
    %c0_i32_0 = arith.constant 0 : i32
    return %arg0, %c0_i32 : i32, i32
  }
  func.func @transform_1(%arg0: i32) -> (i32, i32) {
    %c0_i32 = arith.constant 0 : i32
    %c0_i32_0 = arith.constant 0 : i32
    %c0_i32_1 = arith.constant 0 : i32
    return %c0_i32, %c0_i32_0 : i32, i32
  }
  func.func @transform_2(%arg0: i32) -> (i32, i32) {
    %c0_i32 = arith.constant 0 : i32
    %c0_i32_0 = arith.constant 0 : i32
    return %arg0, %c0_i32 : i32, i32
  }
  func.func @transform_3(%arg0: i32) -> (i32, i32, i32) {
    %c0_i32 = arith.constant 0 : i32
    %c0_i32_0 = arith.constant 0 : i32
    %c0_i32_1 = arith.constant 0 : i32
    return %arg0, %c0_i32, %c0_i32_0 : i32, i32, i32
  }
  func.func @transform_4(%arg0: i32) -> (i32, i32, i32) {
    %c0_i32 = arith.constant 0 : i32
    %c0_i32_0 = arith.constant 0 : i32
    %c0_i32_1 = arith.constant 0 : i32
    return %arg0, %c0_i32, %c0_i32_0 : i32, i32, i32
  }
}

module attributes {stable_mosaic.version = 11 : i64} {
  func.func @_scale_shift_leaky_kernel(%arg0: i32, %arg1: memref<32x128xbf16, #tpu.memory_space<vmem>>, %arg2: memref<1x128xf32, #tpu.memory_space<vmem>>, %arg3: memref<1x128xf32, #tpu.memory_space<vmem>>, %arg4: memref<32x128xbf16, #tpu.memory_space<vmem>>) attributes {dimension_semantics = [#tpu.dimension_semantics<parallel>], iteration_bounds = array<i64: 1>, scalar_prefetch = 0 : i64, scratch_operands = 0 : i64, tpu.core_type = #tpu.core_type<tc>, window_params = [{transform_indices = @transform_0, window_bounds = array<i64: 32, 128>}, {pipeline_mode = #tpu.pipeline_mode<synchronous>, transform_indices = @transform_1, window_bounds = array<i64: 1, 128>}, {pipeline_mode = #tpu.pipeline_mode<synchronous>, transform_indices = @transform_2, window_bounds = array<i64: 1, 128>}, {transform_indices = @transform_3, window_bounds = array<i64: 32, 128>}]} {
    %c0 = arith.constant 0 : index
    %c0_0 = arith.constant 0 : index
    %0 = vector.load %arg1[%c0, %c0_0] : memref<32x128xbf16, #tpu.memory_space<vmem>>, vector<32x128xbf16>
    %1 = arith.extf %0 : vector<32x128xbf16> to vector<32x128xf32>
    %c0_1 = arith.constant 0 : index
    %c0_2 = arith.constant 0 : index
    %2 = vector.load %arg2[%c0_1, %c0_2] : memref<1x128xf32, #tpu.memory_space<vmem>>, vector<1x128xf32>
    %3 = vector.broadcast %2 : vector<1x128xf32> to vector<32x128xf32>
    %4 = arith.mulf %1, %3 : vector<32x128xf32>
    %c0_3 = arith.constant 0 : index
    %c0_4 = arith.constant 0 : index
    %5 = vector.load %arg3[%c0_3, %c0_4] : memref<1x128xf32, #tpu.memory_space<vmem>>, vector<1x128xf32>
    %6 = vector.broadcast %5 : vector<1x128xf32> to vector<32x128xf32>
    %7 = arith.addf %4, %6 : vector<32x128xf32>
    %cst = arith.constant 0.000000e+00 : f32
    %8 = vector.broadcast %cst : f32 to vector<32x128xf32>
    %9 = arith.cmpf ogt, %7, %8 : vector<32x128xf32>
    %cst_5 = arith.constant 2.000000e-01 : f32
    %10 = vector.broadcast %cst_5 : f32 to vector<32x128xf32>
    %11 = arith.mulf %10, %7 : vector<32x128xf32>
    %12 = arith.select %9, %7, %11 : vector<32x128xi1>, vector<32x128xf32>
    %13 = arith.truncf %12 : vector<32x128xf32> to vector<32x128xbf16>
    %c0_6 = arith.constant 0 : index
    %c0_7 = arith.constant 0 : index
    %14 = vector.load %arg4[%c0_6, %c0_7] : memref<32x128xbf16, #tpu.memory_space<vmem>>, vector<32x128xbf16>
    tpu.vector_store %arg4[%c0_6, %c0_7], %13 {strides = array<i32>} : memref<32x128xbf16, #tpu.memory_space<vmem>>, vector<32x128xbf16>,
    return
  }
  func.func @transform_0(%arg0: i32) -> (i32, i32) {
    %c0_i32 = arith.constant 0 : i32
    %c0_i32_0 = arith.constant 0 : i32
    return %arg0, %c0_i32 : i32, i32
  }
  func.func @transform_1(%arg0: i32) -> (i32, i32) {
    %c0_i32 = arith.constant 0 : i32
    %c0_i32_0 = arith.constant 0 : i32
    %c0_i32_1 = arith.constant 0 : i32
    return %c0_i32, %c0_i32_0 : i32, i32
  }
  func.func @transform_2(%arg0: i32) -> (i32, i32) {
    %c0_i32 = arith.constant 0 : i32
    %c0_i32_0 = arith.constant 0 : i32
    %c0_i32_1 = arith.constant 0 : i32
    return %c0_i32, %c0_i32_0 : i32, i32
  }
  func.func @transform_3(%arg0: i32) -> (i32, i32) {
    %c0_i32 = arith.constant 0 : i32
    %c0_i32_0 = arith.constant 0 : i32
    return %arg0, %c0_i32 : i32, i32
  }
}

module attributes {stable_mosaic.version = 11 : i64} {
  func.func @_mm_bias_act_kernel(%arg0: i32, %arg1: memref<8x256xbf16, #tpu.memory_space<vmem>>, %arg2: memref<256x128xbf16, #tpu.memory_space<vmem>>, %arg3: memref<1x128xf32, #tpu.memory_space<vmem>>, %arg4: memref<8x128xf32, #tpu.memory_space<vmem>>) attributes {dimension_semantics = [#tpu.dimension_semantics<parallel>], iteration_bounds = array<i64: 1>, scalar_prefetch = 0 : i64, scratch_operands = 0 : i64, tpu.core_type = #tpu.core_type<tc>, window_params = [{transform_indices = @transform_0, window_bounds = array<i64: 8, 256>}, {pipeline_mode = #tpu.pipeline_mode<synchronous>, transform_indices = @transform_1, window_bounds = array<i64: 256, 128>}, {pipeline_mode = #tpu.pipeline_mode<synchronous>, transform_indices = @transform_2, window_bounds = array<i64: 1, 128>}, {transform_indices = @transform_3, window_bounds = array<i64: 8, 128>}]} {
    %c0 = arith.constant 0 : index
    %c0_0 = arith.constant 0 : index
    %0 = vector.load %arg1[%c0, %c0_0] : memref<8x256xbf16, #tpu.memory_space<vmem>>, vector<8x256xbf16>
    %c0_1 = arith.constant 0 : index
    %c0_2 = arith.constant 0 : index
    %1 = vector.load %arg2[%c0_1, %c0_2] : memref<256x128xbf16, #tpu.memory_space<vmem>>, vector<256x128xbf16>
    %cst = arith.constant dense<0.000000e+00> : vector<8x128xf32>
    %2 = tpu.matmul %0, %1, %cst {dimension_numbers = #tpu.dot_dimension_numbers<[1], [0], [0], [1], [0, 0, 1, 1], [], []>} : vector<8x256xbf16>, vector<256x128xbf16>, vector<8x128xf32> -> vector<8x128xf32>
    %c0_3 = arith.constant 0 : index
    %c0_4 = arith.constant 0 : index
    %3 = vector.load %arg3[%c0_3, %c0_4] : memref<1x128xf32, #tpu.memory_space<vmem>>, vector<1x128xf32>
    %4 = vector.broadcast %3 : vector<1x128xf32> to vector<8x128xf32>
    %5 = arith.addf %2, %4 : vector<8x128xf32>
    %cst_5 = arith.constant 0.000000e+00 : f32
    %6 = vector.broadcast %cst_5 : f32 to vector<8x128xf32>
    %7 = arith.subf %6, %5 : vector<8x128xf32>
    %8 = math.exp %7 : vector<8x128xf32>
    %cst_6 = arith.constant 1.000000e+00 : f32
    %9 = vector.broadcast %cst_6 : f32 to vector<8x128xf32>
    %10 = arith.addf %9, %8 : vector<8x128xf32>
    %11 = tpu.reciprocal %10 {approx = true} : vector<8x128xf32> -> vector<8x128xf32>
    %c0_7 = arith.constant 0 : index
    %c0_8 = arith.constant 0 : index
    %12 = vector.load %arg4[%c0_7, %c0_8] : memref<8x128xf32, #tpu.memory_space<vmem>>, vector<8x128xf32>
    tpu.vector_store %arg4[%c0_7, %c0_8], %11 {strides = array<i32>} : memref<8x128xf32, #tpu.memory_space<vmem>>, vector<8x128xf32>,
    return
  }
  func.func @transform_0(%arg0: i32) -> (i32, i32) {
    %c0_i32 = arith.constant 0 : i32
    %c0_i32_0 = arith.constant 0 : i32
    return %arg0, %c0_i32 : i32, i32
  }
  func.func @transform_1(%arg0: i32) -> (i32, i32) {
    %c0_i32 = arith.constant 0 : i32
    %c0_i32_0 = arith.constant 0 : i32
    %c0_i32_1 = arith.constant 0 : i32
    return %c0_i32, %c0_i32_0 : i32, i32
  }
  func.func @transform_2(%arg0: i32) -> (i32, i32) {
    %c0_i32 = arith.constant 0 : i32
    %c0_i32_0 = arith.constant 0 : i32
    %c0_i32_1 = arith.constant 0 : i32
    return %c0_i32, %c0_i32_0 : i32, i32
  }
  func.func @transform_3(%arg0: i32) -> (i32, i32) {
    %c0_i32 = arith.constant 0 : i32
    %c0_i32_0 = arith.constant 0 : i32
    return %arg0, %c0_i32 : i32, i32
  }
}

</mosaic_0001>

<bundles_post_ra>
// kernel: _lambda_.4
= control target key start
LH: loop header
LB: loop body
LE: loop exit
PB: predicated region body
PF: predicated region fallthrough
CT: control target
= control target key end

     0   :  { %vm118_vm0 = vcmask 654336   ;;  %s653_s1 = inlined_call_operand.vmem [shape: bf16[80,128], index: 1, kind: input, shape index: {}]   ;;  %s654_s0 = inlined_call_operand.vmem [shape: bf16[128,80], index: 0, kind: input, shape index: {}]   ;;  %s655_s2 = inlined_call_operand.vmem [shape: f32[1,128], index: 2, kind: input, shape index: {}]   ;;  %s656_s3 = inlined_call_operand.vmem [shape: bf16[128,128], index: 3, kind: output, shape index: {}]  }
   0x1   :  { %v522_v0 = vld [vmem:[%s653_s1 + $0x20] sm:$0xff]   ;;  %v523_v1 = vld [vmem:[%s653_s1 + $0x18] sm:$0xff]   ;;  %v524_v2 = vld [vmem:[%s653_s1 + $0x10] sm:$0xff]  }
   0x2   :  { %486 = vmatprep.subr.bf16.mxu0 %v522_v0  ;;  %512 = vmatprep.subr.bf16.mxu1 %v522_v0  ;;  %v527_v3 = vld [vmem:[%s654_s0] sm:$0xff]   ;;  %v525_v5 = vld [vmem:[%s653_s1 + $0x8] sm:$0xff]   ;;  %v531_v9 = vld [vmem:[%s654_s0 + $0x10] sm:$0xff]  }
   0x3   :  { %487 = vmatpush3.bf16.msra.mxu0 %v522_v0  ;;  %517 = vmatpush3.bf16.msra.mxu1 %v522_v0  ;;  %v528_v4 = vld [vmem:[%s654_s0 + $0x20] sm:$0xff]   ;;  %v529_v7 = vld [vmem:[%s654_s0 + $0x8] sm:$0xff]   ;;  %v532_v10 = vld [vmem:[%s654_s0 + $0x30] sm:$0xff]  }
   0x4   :  { %488 = vmatprep.subr.bf16.mxu0 %v523_v1  ;;  %513 = vmatprep.subr.bf16.mxu1 %v523_v1  ;;  %v526_v6 = vld [vmem:[%s653_s1] sm:$0xff]   ;;  %v530_v8 = vld [vmem:[%s654_s0 + $0x28] sm:$0xff]   ;;  %v533_v11 = vld [vmem:[%s654_s0 + $0x18] sm:$0xff]  }
   0x5   :  { %496 = vmatprep.mubr.msk.bf16.mxu0 %vm118_vm0, %v527_v3  ;;  %504 = vmatprep.mubr.msk.bf16.mxu1 %vm118_vm0, %v528_v4  ;;  %v534_v12 = vld [vmem:[%s654_s0 + $0x38] sm:$0xff]   ;;  %v605_v13 = vld [vmem:[%s655_s2] ss:$0 sm:$0xff] }
   0x7   :  { %489 = vmatpush3.bf16.msra.mxu0 %v523_v1  ;;  %518 = vmatpush3.bf16.msra.mxu1 %v523_v1 }
   0x8   :  { %490 = vmatprep.subr.bf16.mxu0 %v524_v2  ;;  %514 = vmatprep.subr.bf16.mxu1 %v524_v2 }
   0xb   :  { %491 = vmatpush3.bf16.msra.mxu0 %v524_v2  ;;  %519 = vmatpush3.bf16.msra.mxu1 %v524_v2 }
   0xc   :  { %492 = vmatprep.subr.bf16.mxu0 %v525_v5  ;;  %515 = vmatprep.subr.bf16.mxu1 %v525_v5 }
   0xf   :  { %493 = vmatpush3.bf16.msra.mxu0 %v525_v5  ;;  %520 = vmatpush3.bf16.msra.mxu1 %v525_v5 }
  0x10   :  { %494 = vmatprep.subr.bf16.mxu0 %v526_v6  ;;  %516 = vmatprep.subr.bf16.mxu1 %v526_v6 }
  0x13   :  { %495 = vmatpush3.bf16.msra.mxu0 %v526_v6  ;;  %521 = vmatpush3.bf16.msra.mxu1 %v526_v6 }
  0x16   :  { %497 = vmatmul.mubr.msk.bf16.vlgmr.msra.gmra.mxu0 %vm118_vm0, %v529_v7  ;;  %505 = vmatmul.mubr.msk.bf16.vlgmr.msra.gmra.mxu1 %vm118_vm0, %v530_v8 }
  0x17   :  { %500 = vmatprep.mubr.msk.bf16.mxu0 %vm118_vm0, %v531_v9  ;;  %508 = vmatprep.mubr.msk.bf16.mxu1 %vm118_vm0, %v532_v10 }
  0x1e   :  { %501 = vmatmul.mubr.msk.bf16.gmra.mxu0 %vm118_vm0, %v533_v11  ;;  %509 = vmatmul.mubr.msk.bf16.gmra.mxu1 %vm118_vm0, %v534_v12 }
  0xd6   :  { %v498_v14 = vpop.f32.mrf.mxu0  ;;  %v506_v15 = vpop.f32.mrf.mxu1 }
  0xd7   :  { %v186_v16 = vadd.f32 %v498_v14, %v605_v13  ;;  %v218_v17 = vadd.f32 %v506_v15, %v605_v13 }
  0xd8   :  { %v177_v18 = vpop.f32.mrf.mxu0  ;;  %v209_v19 = vpop.f32.mrf.mxu1 }
  0xd9   :  { %vm242_vm1 = vcmp.gt.f32.partialorder %v186_v16, 0.0  ;;  %v258_v20 = vmul.f32 0.2, %v186_v16  ;;  %vm250_vm2 = vcmp.gt.f32.partialorder %v218_v17, 0.0  ;;  %v266_v21 = vmul.f32 0.2, %v218_v17 }
  0xda   :  { %v178_v22 = vadd.f32 %v605_v13, %v177_v18  ;;  %v210_v23 = vadd.f32 %v605_v13, %v209_v19  ;;  %v499_v24 = vpop.f32.mrf.mxu0  ;;  %v507_v25 = vpop.f32.mrf.mxu1 }
  0xdb   :  { %v189_v26 = vadd.f32 %v499_v24, %v605_v13  ;;  %v221_v27 = vadd.f32 %v507_v25, %v605_v13  ;;  %v274_v28 = vsel %vm242_vm1, %v186_v16, %v258_v20  ;;  %v282_v29 = vsel %vm250_vm2, %v218_v17, %v266_v21 }
  0xdc   :  { %vm240_vm3 = vcmp.gt.f32.partialorder %v178_v22, 0.0  ;;  %v256_v30 = vmul.f32 0.2, %v178_v22  ;;  %v180_v31 = vpop.f32.mrf.mxu0  ;;  %v212_v32 = vpop.f32.mrf.mxu1  ;;  %vm248_vm6 = vcmp.gt.f32.partialorder %v210_v23, 0.0  ;;  %v264_v35 = vmul.f32 0.2, %v210_v23 }
  0xdd   :  { %vm243_vm4 = vcmp.gt.f32.partialorder %v189_v26, 0.0  ;;  %v259_v33 = vmul.f32 0.2, %v189_v26  ;;  %vm251_vm5 = vcmp.gt.f32.partialorder %v221_v27, 0.0  ;;  %v267_v34 = vmul.f32 0.2, %v221_v27 }
  0xde   :  { %v181_v36 = vadd.f32 %v605_v13, %v180_v31  ;;  %v213_v37 = vadd.f32 %v605_v13, %v212_v32  ;;  %v502_v38 = vpop.f32.mrf.mxu0  ;;  %v510_v39 = vpop.f32.mrf.mxu1  ;;  %v272_v50 = vsel %vm240_vm3, %v178_v22, %v256_v30  ;;  %v280_v55 = vsel %vm248_vm6, %v210_v23, %v264_v35 }
  0xdf   :  { %v275_v40 = vsel %vm243_vm4, %v189_v26, %v259_v33  ;;  %v283_v41 = vsel %vm251_vm5, %v221_v27, %v267_v34  ;;  %v202_v42 = vadd.f32 %v502_v38, %v605_v13  ;;  %v234_v43 = vadd.f32 %v510_v39, %v605_v13 }
  0xe0   :  { %v434_v44 = vpack.c.bf16 %v275_v40, %v274_v28  ;;  %v454_v45 = vpack.c.bf16 %v283_v41, %v282_v29  ;;  %vm241_vm7 = vcmp.gt.f32.partialorder %v181_v36, 0.0  ;;  %v257_v46 = vmul.f32 0.2, %v181_v36  ;;  %v193_v47 = vpop.f32.mrf.mxu0  ;;  %v225_v48 = vpop.f32.mrf.mxu1 }
  0xe1   :  { %vm249_vm8 = vcmp.gt.f32.partialorder %v213_v37, 0.0  ;;  %v265_v49 = vmul.f32 0.2, %v213_v37  ;;  %v194_v52 = vadd.f32 %v605_v13, %v193_v47  ;;  %v226_v58 = vadd.f32 %v605_v13, %v225_v48 }
  0xe2   :  { %466 = vst [vmem:[%s656_s3 + $0x8] sm:$0xff] %v434_v44   ;;  %470 = vst [vmem:[%s656_s3 + $0x28] sm:$0xff] %v454_v45   ;;  %v273_v51 = vsel %vm241_vm7, %v181_v36, %v257_v46  ;;  %v503_v53 = vpop.f32.mrf.mxu0  ;;  %v511_v54 = vpop.f32.mrf.mxu1  ;;  %vm246_vm9 = vcmp.gt.f32.partialorder %v202_v42, 0.0  ;;  %v262_v60 = vmul.f32 0.2, %v202_v42  ;;  %vm254_vm10 = vcmp.gt.f32.partialorder %v234_v43, 0.0 }
  0xe3   :  { %v429_v56 = vpack.c.bf16 %v273_v51, %v272_v50  ;;  %v281_v57 = vsel %vm249_vm8, %v213_v37, %v265_v49  ;;  %v270_v63 = vmul.f32 0.2, %v234_v43  ;;  %vm244_vm11 = vcmp.gt.f32.partialorder %v194_v52, 0.0 }
  0xe4   :  { %v449_v59 = vpack.c.bf16 %v281_v57, %v280_v55  ;;  %v196_v61 = vpop.f32.mrf.mxu0  ;;  %v228_v62 = vpop.f32.mrf.mxu1  ;;  %v205_v0 = vadd.f32 %v503_v53, %v605_v13  ;;  %v237_v1 = vadd.f32 %v511_v54, %v605_v13  ;;  %v260_v2 = vmul.f32 0.2, %v194_v52 }
  0xe5   :  { %430 = vst [vmem:[%s656_s3] sm:$0xff] %v429_v56   ;;  %vm252_vm12 = vcmp.gt.f32.partialorder %v226_v58, 0.0  ;;  %v197_v3 = vadd.f32 %v605_v13, %v196_v61  ;;  %v229_v4 = vadd.f32 %v605_v13, %v228_v62  ;;  %v268_v5 = vmul.f32 0.2, %v226_v58 }
  0xe6   :  { %469 = vst [vmem:[%s656_s3 + $0x20] sm:$0xff] %v449_v59   ;;  %vm247_vm13 = vcmp.gt.f32.partialorder %v205_v0, 0.0  ;;  %v263_v6 = vmul.f32 0.2, %v205_v0  ;;  %vm255_vm14 = vcmp.gt.f32.partialorder %v237_v1, 0.0  ;;  %v278_v9 = vsel %vm246_vm9, %v202_v42, %v262_v60 }
  0xe7   :  { %v271_v7 = vmul.f32 0.2, %v237_v1  ;;  %vm245_vm15 = vcmp.gt.f32.partialorder %v197_v3, 0.0  ;;  %v261_v8 = vmul.f32 0.2, %v197_v3  ;;  %vm253_vm0 = vcmp.gt.f32.partialorder %v229_v4, 0.0 }
  0xe8   :  { %v286_v10 = vsel %vm254_vm10, %v234_v43, %v270_v63  ;;  %v279_v11 = vsel %vm247_vm13, %v205_v0, %v263_v6  ;;  %v269_v12 = vmul.f32 0.2, %v229_v4  ;;  %v276_v14 = vsel %vm244_vm11, %v194_v52, %v260_v2 }
  0xe9   :  { %v444_v15 = vpack.c.bf16 %v279_v11, %v278_v9  ;;  %v287_v16 = vsel %vm255_vm14, %v237_v1, %v271_v7  ;;  %v277_v17 = vsel %vm245_vm15, %v197_v3, %v261_v8  ;;  %v284_v13 = vsel %vm252_vm12, %v226_v58, %v268_v5 }
  0xea   :  { %v464_v18 = vpack.c.bf16 %v287_v16, %v286_v10  ;;  %v439_v19 = vpack.c.bf16 %v277_v17, %v276_v14  ;;  %v285_v20 = vsel %vm253_vm0, %v229_v4, %v269_v12 }
  0xeb   :  { %468 = vst [vmem:[%s656_s3 + $0x18] sm:$0xff] %v444_v15   ;;  %v459_v21 = vpack.c.bf16 %v285_v20, %v284_v13 }
  0xec   :  { %472 = vst [vmem:[%s656_s3 + $0x38] sm:$0xff] %v464_v18   ;;  %467 = vst [vmem:[%s656_s3 + $0x10] sm:$0xff] %v439_v19  }
  0xed   :  { %471 = vst [vmem:[%s656_s3 + $0x30] sm:$0xff] %v459_v21  }

// kernel: _lambda_.5
= control target key start
LH: loop header
LB: loop body
LE: loop exit
PB: predicated region body
PF: predicated region fallthrough
CT: control target
= control target key end

     0   :  { %s336_s1 = inlined_call_operand.vmem [shape: bf16[128,128], index: 1, kind: input, shape index: {}]   ;;  %s337_s0 = inlined_call_operand.vmem [shape: bf16[32,128], index: 0, kind: input, shape index: {}]   ;;  %s338_s2 = inlined_call_operand.vmem [shape: bf16[32,128], index: 2, kind: output, shape index: {0}]   ;;  %s339_s3 = inlined_call_operand.vmem [shape: f32[1,1,128], index: 3, kind: output, shape index: {1}]   ;;  %s340_s4 = inlined_call_operand.vmem [shape: f32[1,1,128], index: 4, kind: output, shape index: {2}]  }
   0x1   :  { %v259_v0 = vld [vmem:[%s336_s1 + $0x38] sm:$0xff]   ;;  %v260_v1 = vld [vmem:[%s336_s1 + $0x30] sm:$0xff]   ;;  %v261_v2 = vld [vmem:[%s336_s1 + $0x28] sm:$0xff]  }
   0x2   :  { %239 = vmatprep.subr.bf16.mxu0 %v259_v0  ;;  %v262_v3 = vld [vmem:[%s336_s1 + $0x20] sm:$0xff]   ;;  %v263_v5 = vld [vmem:[%s336_s1 + $0x18] sm:$0xff]   ;;  %v264_v6 = vld [vmem:[%s336_s1 + $0x10] sm:$0xff]  }
   0x3   :  { %240 = vmatpush3.bf16.msra.mxu0 %v259_v0  ;;  %v267_v4 = vld [vmem:[%s337_s0] sm:$0xff]   ;;  %v265_v7 = vld [vmem:[%s336_s1 + $0x8] sm:$0xff]  }
   0x4   :  { %241 = vmatprep.subr.bf16.mxu0 %v260_v1  ;;  %255 = vmatprep.mubr.bf16.mxu0 %v267_v4  ;;  %v266_v8 = vld [vmem:[%s336_s1] sm:$0xff]   ;;  %v268_v9 = vld [vmem:[%s337_s0 + $0x8] sm:$0xff]  }
   0x7   :  { %242 = vmatpush3.bf16.msra.mxu0 %v260_v1 }
   0x8   :  { %243 = vmatprep.subr.bf16.mxu0 %v261_v2 }
   0xb   :  { %244 = vmatpush3.bf16.msra.mxu0 %v261_v2 }
   0xc   :  { %245 = vmatprep.subr.bf16.mxu0 %v262_v3 }
   0xf   :  { %246 = vmatpush3.bf16.msra.mxu0 %v262_v3 }
  0x10   :  { %247 = vmatprep.subr.bf16.mxu0 %v263_v5 }
  0x13   :  { %248 = vmatpush3.bf16.msra.mxu0 %v263_v5 }
  0x14   :  { %249 = vmatprep.subr.bf16.mxu0 %v264_v6 }
  0x17   :  { %250 = vmatpush3.bf16.msra.mxu0 %v264_v6 }
  0x18   :  { %251 = vmatprep.subr.bf16.mxu0 %v265_v7 }
  0x1b   :  { %252 = vmatpush3.bf16.msra.mxu0 %v265_v7 }
  0x1c   :  { %253 = vmatprep.subr.bf16.mxu0 %v266_v8 }
  0x1f   :  { %254 = vmatpush3.bf16.msra.mxu0 %v266_v8 }
  0x22   :  { %256 = vmatmul.mubr.bf16.vlgmr.msra.gmra.mxu0 %v268_v9 }
  0xe2   :  { %v257_v10 = vpop.f32.mrf.mxu0 }
  0xe3   :  { %v176_v19 = vmul.f32 %v257_v10, %v257_v10 }
  0xe4   :  { %v129_v11 = vpop.f32.mrf.mxu0 }
  0xe5   :  { %v174_v15 = vmul.f32 %v129_v11, %v129_v11 }
  0xe6   :  { %v258_v12 = vpop.f32.mrf.mxu0 }
  0xe7   :  { %v226_v13 = vpack.c.bf16 %v258_v12, %v257_v10  ;;  %v177_v22 = vmul.f32 %v258_v12, %v258_v12 }
  0xe8   :  { %v132_v14 = vpop.f32.mrf.mxu0 }
  0xe9   :  { %v221_v16 = vpack.c.bf16 %v132_v14, %v129_v11  ;;  %228 = vst [vmem:[%s338_s2 + $0x8] sm:$0xff] %v226_v13   ;;  %v164_v17 = vadd.f32 %v132_v14, %v129_v11  ;;  %v175_v18 = vmul.f32 %v132_v14, %v132_v14 }
  0xeb   :  { %222 = vst [vmem:[%s338_s2] sm:$0xff] %v221_v16   ;;  %v165_v20 = vadd.f32 %v257_v10, %v164_v17  ;;  %v178_v21 = vadd.f32 %v175_v18, %v174_v15 }
  0xed   :  { %v166_v23 = vadd.f32 %v258_v12, %v165_v20  ;;  %v179_v24 = vadd.f32 %v178_v21, %v176_v19 }
  0xef   :  { %v167_v25 = vrot.slane %v166_v23, 4  ;;  %v180_v26 = vadd.f32 %v179_v24, %v177_v22 }
  0xf1   :  { %v168_v27 = vadd.f32 %v167_v25, %v166_v23  ;;  %v181_v28 = vrot.slane %v180_v26, 4 }
  0xf3   :  { %v169_v29 = vrot.slane %v168_v27, 2  ;;  %v182_v30 = vadd.f32 %v181_v28, %v180_v26 }
  0xf5   :  { %v170_v31 = vadd.f32 %v169_v29, %v168_v27  ;;  %v183_v32 = vrot.slane %v182_v30, 2 }
  0xf7   :  { %v171_v33 = vrot.slane %v170_v31, 1  ;;  %v184_v34 = vadd.f32 %v183_v32, %v182_v30 }
  0xf9   :  { %v172_v35 = vadd.f32 %v171_v33, %v170_v31  ;;  %v185_v36 = vrot.slane %v184_v34, 1 }
  0xfb   :  { %173 = vst [vmem:[%s339_s3] sm:$0x1] %v172_v35  ;;  %v186_v37 = vadd.f32 %v185_v36, %v184_v34 }
  0xfd   :  { %187 = vst [vmem:[%s340_s4] sm:$0x1] %v186_v37 }

// kernel: _lambda_.6
= control target key start
LH: loop header
LB: loop body
LE: loop exit
PB: predicated region body
PF: predicated region fallthrough
CT: control target
= control target key end

     0   :  { %s148_s0 = inlined_call_operand.vmem [shape: bf16[32,128], index: 0, kind: input, shape index: {}]   ;;  %s149_s1 = inlined_call_operand.vmem [shape: f32[1,128], index: 1, kind: input, shape index: {}]   ;;  %s150_s2 = inlined_call_operand.vmem [shape: f32[1,128], index: 2, kind: input, shape index: {}]   ;;  %s151_s3 = inlined_call_operand.vmem [shape: bf16[32,128], index: 3, kind: output, shape index: {}]  }
   0x1   :  { %v91_v0 = vld [vmem:[%s148_s0] sm:$0xff]   ;;  %v108_v4 = vld [vmem:[%s148_s0 + $0x8] sm:$0xff]  }
   0x2   :  { %v80_v1 = vld [vmem:[%s149_s1] ss:$0 sm:$0xff]  ;;  %v92_v2 = vunpack.c.l.bf16 %v91_v0  ;;  %v93_v3 = vunpack.c.h.bf16 %v91_v0  ;;  %v96_v6 = vunpack.c.l.bf16 %v108_v4  ;;  %v97_v7 = vunpack.c.h.bf16 %v108_v4 }
   0x3   :  { %v81_v5 = vld [vmem:[%s150_s2] ss:$0 sm:$0xff] }
   0x4   :  { %v29_v8 = vmul.f32 %v92_v2, %v80_v1  ;;  %v30_v9 = vmul.f32 %v93_v3, %v80_v1  ;;  %v31_v10 = vmul.f32 %v96_v6, %v80_v1  ;;  %v32_v11 = vmul.f32 %v97_v7, %v80_v1 }
   0x6   :  { %v40_v12 = vadd.f32 %v81_v5, %v29_v8  ;;  %v41_v13 = vadd.f32 %v81_v5, %v30_v9  ;;  %v42_v14 = vadd.f32 %v81_v5, %v31_v10  ;;  %v43_v15 = vadd.f32 %v81_v5, %v32_v11 }
   0x8   :  { %vm44_vm0 = vcmp.gt.f32.partialorder %v40_v12, 0.0  ;;  %vm45_vm1 = vcmp.gt.f32.partialorder %v41_v13, 0.0  ;;  %v48_v16 = vmul.f32 0.2, %v40_v12  ;;  %v49_v17 = vmul.f32 0.2, %v41_v13 }
   0x9   :  { %vm46_vm2 = vcmp.gt.f32.partialorder %v42_v14, 0.0  ;;  %vm47_vm3 = vcmp.gt.f32.partialorder %v43_v15, 0.0  ;;  %v50_v18 = vmul.f32 0.2, %v42_v14  ;;  %v51_v19 = vmul.f32 0.2, %v43_v15 }
   0xa   :  { %v52_v20 = vsel %vm44_vm0, %v40_v12, %v48_v16  ;;  %v53_v21 = vsel %vm45_vm1, %v41_v13, %v49_v17 }
   0xb   :  { %v101_v22 = vpack.c.bf16 %v53_v21, %v52_v20  ;;  %v54_v23 = vsel %vm46_vm2, %v42_v14, %v50_v18  ;;  %v55_v24 = vsel %vm47_vm3, %v43_v15, %v51_v19 }
   0xc   :  { %v106_v25 = vpack.c.bf16 %v55_v24, %v54_v23 }
   0xd   :  { %102 = vst [vmem:[%s151_s3] sm:$0xff] %v101_v22  }
   0xe   :  { %109 = vst [vmem:[%s151_s3 + $0x8] sm:$0xff] %v106_v25  }

// kernel: _lambda_.7
= control target key start
LH: loop header
LB: loop body
LE: loop exit
PB: predicated region body
PF: predicated region fallthrough
CT: control target
= control target key end

     0   :  { %s348_s1 = inlined_call_operand.vmem [shape: bf16[256,128], index: 1, kind: input, shape index: {}]   ;;  %s349_s0 = inlined_call_operand.vmem [shape: bf16[8,256], index: 0, kind: input, shape index: {}]   ;;  %s350_s2 = inlined_call_operand.vmem [shape: f32[1,128], index: 2, kind: input, shape index: {}]   ;;  %s351_s3 = inlined_call_operand.vmem [shape: f32[8,128], index: 3, kind: output, shape index: {}]  }
   0x1   :  { %v249_v0 = vld [vmem:[%s348_s1 + $0x78] sm:$0xff]   ;;  %v251_v2 = vld [vmem:[%s348_s1 + $0x70] sm:$0xff]   ;;  %v253_v4 = vld [vmem:[%s348_s1 + $0x68] sm:$0xff]  }
   0x2   :  { %v250_v1 = vld [vmem:[%s348_s1 + $0x38] sm:$0xff]   ;;  %227 = vmatprep.subr.bf16.mxu0 %v249_v0  ;;  %v252_v3 = vld [vmem:[%s348_s1 + $0x30] sm:$0xff]   ;;  %v254_v5 = vld [vmem:[%s348_s1 + $0x28] sm:$0xff]  }
   0x3   :  { %228 = vmatpush3.bf16.msra.mxu0 %v250_v1  ;;  %v255_v6 = vld [vmem:[%s348_s1 + $0x60] sm:$0xff]   ;;  %v257_v8 = vld [vmem:[%s348_s1 + $0x58] sm:$0xff]   ;;  %v259_v10 = vld [vmem:[%s348_s1 + $0x50] sm:$0xff]  }
   0x4   :  { %229 = vmatprep.subr.bf16.mxu0 %v251_v2  ;;  %v256_v7 = vld [vmem:[%s348_s1 + $0x20] sm:$0xff]   ;;  %v258_v9 = vld [vmem:[%s348_s1 + $0x18] sm:$0xff]   ;;  %v260_v13 = vld [vmem:[%s348_s1 + $0x10] sm:$0xff]  }
   0x5   :  { %v15_v11 = vld [vmem:[%s349_s0] sm:$0xff]  ;;  %v261_v14 = vld [vmem:[%s348_s1 + $0x48] sm:$0xff]  }
   0x6   :  { %v210_v12 = vcombine.high %v15_v11, %v15_v11  ;;  %v262_v15 = vld [vmem:[%s348_s1 + $0x8] sm:$0xff]   ;;  %v263_v16 = vld [vmem:[%s348_s1 + $0x40] sm:$0xff]   ;;  %v209_v18 = vcombine.low %v15_v11, %v15_v11 }
   0x7   :  { %230 = vmatpush3.bf16.msra.mxu0 %v252_v3  ;;  %v264_v17 = vld [vmem:[%s348_s1] sm:$0xff]  }
   0x8   :  { %231 = vmatprep.subr.bf16.mxu0 %v253_v4  ;;  %190 = vmatprep.mubr.bf16.mxu0 %v210_v12  ;;  %v208_v20 = vld [vmem:[%s350_s2] ss:$0 sm:$0xff] }
   0xb   :  { %232 = vmatpush3.bf16.msra.mxu0 %v254_v5 }
   0xc   :  { %233 = vmatprep.subr.bf16.mxu0 %v255_v6 }
   0xf   :  { %234 = vmatpush3.bf16.msra.mxu0 %v256_v7 }
  0x10   :  { %235 = vmatprep.subr.bf16.mxu0 %v257_v8 }
  0x13   :  { %236 = vmatpush3.bf16.msra.mxu0 %v258_v9 }
  0x14   :  { %237 = vmatprep.subr.bf16.mxu0 %v259_v10 }
  0x17   :  { %238 = vmatpush3.bf16.msra.mxu0 %v260_v13 }
  0x18   :  { %239 = vmatprep.subr.bf16.mxu0 %v261_v14 }
  0x1b   :  { %240 = vmatpush3.bf16.msra.mxu0 %v262_v15 }
  0x1c   :  { %241 = vmatprep.subr.bf16.mxu0 %v263_v16 }
  0x1f   :  { %242 = vmatpush3.bf16.msra.mxu0 %v264_v17 }
  0x22   :  { %191 = vmatmul.mubr.bf16.vlgmr.msra.gmra.mxu0 %v209_v18 }
  0xe2   :  { %v243_v19 = vpop.f32.mrf.mxu0 }
  0xe4   :  { %v244_v21 = vpop.f32.mrf.mxu0 }
  0xe5   :  { %v245_v22 = vadd.f32 %v244_v21, %v243_v19 }
  0xe6   :  { %v246_v23 = vpop.f32.mrf.mxu0 }
  0xe7   :  { %v193_v24 = vadd.f32 %v245_v22, %v208_v20 }
  0xe8   :  { %v247_v25 = vpop.f32.mrf.mxu0 }
  0xe9   :  { %v198_v26 = vsub.f32 0.0, %v193_v24 }
  0xeb   :  { %v199_v27 = vmul.f32 1.442695, %v198_v26 }
  0xed   :  { %267 = vpow2.f32 %v199_v27 }
  0xfa   :  { %v268_v28 = vpop.eup %267 }
  0xfb   :  { %v201_v29 = vadd.f32 1.0, %v268_v28 }
  0xfd   :  { %269 = vrcp.f32 %v201_v29 }
 0x10a   :  { %v270_v30 = vpop.eup %269 }
 0x10b   :  { %203 = vst [vmem:[%s351_s3] sm:$0xff] %v270_v30 }

</bundles_post_ra>
